<compile_context>
chip_gen: v7x
topology: tpu7x:2x2x1
jax: 0.10.0
libtpu: 0.0.40
codegen_flags: <defaults>
</compile_context>

<pallas_src>
import functools

import jax
import jax.numpy as jnp
from jax import lax
from jax.experimental import pallas as pl
from jax.experimental.pallas import tpu as pltpu

EPS = 1e-5


# ----------------------------- Pallas kernel ------------------------------- #

def _fused_dsconv_kernel(x_ref, w9_ref, shift1_ref, wpw_ref, shift2_ref,
                         o_ref, xp_ref, *, stride, Ho, Wo):
    # x_ref     : (1, H, W, C)     NHWC input tile (one batch element, unpadded)
    # w9_ref    : (9, C)           3x3 depthwise taps with BN1 scale folded in
    # shift1_ref: (1, C)           BN1 shift
    # wpw_ref   : (Cout, C)        1x1 conv weights with BN2 scale folded in
    # shift2_ref: (Cout, 1)        BN2 shift
    # o_ref     : (1, Cout, Ho*Wo) output block -- lane-dense, already NCHW order
    # xp_ref    : (H+2, W+2, C)    VMEM scratch holding the zero-padded input
    H, W, C = x_ref.shape[1], x_ref.shape[2], x_ref.shape[3]

    # In-kernel zero padding (padding=1) -- avoids a separate XLA pad pass.
    xp_ref[...] = jnp.zeros_like(xp_ref)
    xp_ref[1:H + 1, 1:W + 1, :] = x_ref[0]

    def _win(start, size):
        if stride == 1:
            return pl.ds(start, size)
        return pl.ds(start, size, stride=stride)

    # Strided 3x3 depthwise conv (BN1 scale already folded into w9).
    # Stride is applied directly on the load window: no redundant compute.
    acc = jnp.zeros((Ho, Wo, C), jnp.float32)
    for ky in range(3):
        for kx in range(3):
            tap = xp_ref[_win(ky, Ho), _win(kx, Wo), :]
            acc = acc + tap * w9_ref[ky * 3 + kx, :]

    # BN1 shift + ReLU, then flatten spatial dims for the pointwise matmul.
    y1 = jnp.maximum(acc + shift1_ref[0, :], 0.0)             # (Ho, Wo, C)
    y1_2d = y1.reshape(Ho * Wo, C)                            # (M, Cin)

    # Pointwise 1x1 conv as a transposed MXU matmul: (Cout, Cin) x (M, Cin)^T
    # -> (Cout, M).  Output is lane-dense along M and matches NCHW directly.
    y2 = lax.dot_general(wpw_ref[...], y1_2d,
                         dimension_numbers=(((1,), (1,)), ((), ())),
                         preferred_element_type=jnp.float32)  # (Cout, M)
    y2 = y2 + shift2_ref[...]                                 # BN2 shift
    o_ref[0] = jnp.maximum(y2, 0.0).astype(o_ref.dtype)       # ReLU


# ------------------------------- Wrapper ----------------------------------- #

def _fold_bn(gamma, beta, mean, var):
    scale = gamma / jnp.sqrt(var + EPS)
    shift = beta - mean * scale
    return scale.astype(jnp.float32), shift.astype(jnp.float32)


def depthwise_separable_conv(x_nchw, params, stride):
    """Forward pass of DepthwiseSeparableConv (BatchNorm in eval mode)."""
    (w_dw, g1, b1, m1, v1, w_pw, g2, b2, m2, v2) = params
    N, C, H, W = x_nchw.shape
    Cout = w_pw.shape[0]
    Ho = (H - 1) // stride + 1        # kernel=3, padding=1
    Wo = (W - 1) // stride + 1
    M = Ho * Wo

    # NCHW -> NHWC so channels ride the minor (lane) axis inside the kernel.
    # TODO(synk): keep the surrounding model channels-last to remove this pass.
    x = jnp.transpose(x_nchw, (0, 2, 3, 1)).astype(jnp.float32)

    scale1, shift1 = _fold_bn(g1, b1, m1, v1)
    scale2, shift2 = _fold_bn(g2, b2, m2, v2)

    # Fold BN scales into the conv weights (kernel only adds shift + ReLU).
    w9c = (jnp.transpose(w_dw, (1, 2, 0)).reshape(9, C).astype(jnp.float32)
           * scale1[None, :])                                  # (9, Cin)
    wpw = w_pw.astype(jnp.float32) * scale2[:, None]           # (Cout, Cin)

    kernel = functools.partial(_fused_dsconv_kernel,
                               stride=stride, Ho=Ho, Wo=Wo)

    out = pl.pallas_call(
        kernel,
        out_shape=jax.ShapeDtypeStruct((N, Cout, M), jnp.float32),
        grid=(N,),
        in_specs=[
            pl.BlockSpec((1, H, W, C), lambda n: (n, 0, 0, 0)),
            pl.BlockSpec((9, C), lambda n: (0, 0)),
            pl.BlockSpec((1, C), lambda n: (0, 0)),
            pl.BlockSpec((Cout, C), lambda n: (0, 0)),
            pl.BlockSpec((Cout, 1), lambda n: (0, 0)),
        ],
        out_specs=pl.BlockSpec((1, Cout, M), lambda n: (n, 0, 0)),
        scratch_shapes=[pltpu.VMEM((H + 2, W + 2, C), jnp.float32)],
        compiler_params=pltpu.CompilerParams(
            dimension_semantics=("parallel",)),
    )(x, w9c, shift1[None, :], wpw, shift2[:, None])

    # (N, Cout, Ho*Wo) -> (N, Cout, Ho, Wo): pure metadata reshape, already NCHW.
    return out.reshape(N, Cout, Ho, Wo)


# ---------------------------- Pure-JAX reference ---------------------------- #

def reference(x_nchw, params, stride):
    (w_dw, g1, b1, m1, v1, w_pw, g2, b2, m2, v2) = params
    C = x_nchw.shape[1]

    def bn(x, g, b, m, v):
        g, b, m, v = (t[None, :, None, None] for t in (g, b, m, v))
        return (x - m) / jnp.sqrt(v + EPS) * g + b

    dw = lax.conv_general_dilated(
        x_nchw, w_dw[:, None, :, :], (stride, stride), ((1, 1), (1, 1)),
        feature_group_count=C, dimension_numbers=('NCHW', 'OIHW', 'NCHW'))
    y = jnp.maximum(bn(dw, g1, b1, m1, v1), 0.0)
    pw = lax.conv_general_dilated(
        y, w_pw[:, :, None, None], (1, 1), ((0, 0), (0, 0)),
        dimension_numbers=('NCHW', 'OIHW', 'NCHW'))
    return jnp.maximum(bn(pw, g2, b2, m2, v2), 0.0)


# ---------------------------------- Main ------------------------------------ #

if __name__ == "__main__":
    key = jax.random.PRNGKey(0)
    N, Cin, Cout, H, W = 2, 8, 16, 16, 16
    ks = jax.random.split(key, 12)

    x = jax.random.normal(ks[0], (N, Cin, H, W), jnp.float32)

    # depthwise Conv2d(Cin, Cin, k=3, groups=Cin, bias=False): weight (Cin, 3, 3)
    w_dw = 0.3 * jax.random.normal(ks[1], (Cin, 3, 3), jnp.float32)
    # BatchNorm2d(Cin) eval-mode parameters / running stats
    g1 = 1.0 + 0.1 * jax.random.normal(ks[2], (Cin,), jnp.float32)
    b1 = 0.1 * jax.random.normal(ks[3], (Cin,), jnp.float32)
    m1 = 0.1 * jax.random.normal(ks[4], (Cin,), jnp.float32)
    v1 = jnp.abs(jax.random.normal(ks[5], (Cin,), jnp.float32)) + 0.5
    # pointwise Conv2d(Cin, Cout, k=1, bias=False): weight (Cout, Cin)
    w_pw = 0.3 * jax.random.normal(ks[6], (Cout, Cin), jnp.float32)
    # BatchNorm2d(Cout)
    g2 = 1.0 + 0.1 * jax.random.normal(ks[7], (Cout,), jnp.float32)
    b2 = 0.1 * jax.random.normal(ks[8], (Cout,), jnp.float32)
    m2 = 0.1 * jax.random.normal(ks[9], (Cout,), jnp.float32)
    v2 = jnp.abs(jax.random.normal(ks[10], (Cout,), jnp.float32)) + 0.5

    params = (w_dw, g1, b1, m1, v1, w_pw, g2, b2, m2, v2)

    # stride = 2 (the in-kernel strided path)
    out2 = jax.block_until_ready(depthwise_separable_conv(x, params, 2))
    ref2 = jax.block_until_ready(reference(x, params, 2))
    assert out2.shape == ref2.shape, (out2.shape, ref2.shape)
    assert jnp.allclose(out2, ref2, rtol=1e-4, atol=1e-4), (
        float(jnp.max(jnp.abs(out2 - ref2))))

    # stride = 1 (unit-stride path)
    out1 = jax.block_until_ready(depthwise_separable_conv(x, params, 1))
    ref1 = jax.block_until_ready(reference(x, params, 1))
    assert out1.shape == ref1.shape, (out1.shape, ref1.shape)
    assert jnp.allclose(out1, ref1, rtol=1e-4, atol=1e-4), (
        float(jnp.max(jnp.abs(out1 - ref1))))

    print("KERNEL_OK")
</pallas_src>

<mosaic_0001>
module attributes {stable_mosaic.version = 11 : i64} {
  func.func @_fused_dsconv_kernel(%arg0: i32, %arg1: memref<1x16x16x8xf32, #tpu.memory_space<vmem>>, %arg2: memref<9x8xf32, #tpu.memory_space<vmem>>, %arg3: memref<1x8xf32, #tpu.memory_space<vmem>>, %arg4: memref<16x8xf32, #tpu.memory_space<vmem>>, %arg5: memref<16x1xf32, #tpu.memory_space<vmem>>, %arg6: memref<1x16x64xf32, #tpu.memory_space<vmem>>, %arg7: memref<18x18x8xf32, #tpu.memory_space<vmem>>) attributes {dimension_semantics = [#tpu.dimension_semantics<parallel>], iteration_bounds = array<i64: 2>, scalar_prefetch = 0 : i64, scratch_operands = 1 : i64, tpu.core_type = #tpu.core_type<tc>, window_params = [{transform_indices = @transform_0, window_bounds = array<i64: 1, 16, 16, 8>}, {pipeline_mode = #tpu.pipeline_mode<synchronous>, transform_indices = @transform_1, window_bounds = array<i64: 9, 8>}, {pipeline_mode = #tpu.pipeline_mode<synchronous>, transform_indices = @transform_2, window_bounds = array<i64: 1, 8>}, {pipeline_mode = #tpu.pipeline_mode<synchronous>, transform_indices = @transform_3, window_bounds = array<i64: 16, 8>}, {pipeline_mode = #tpu.pipeline_mode<synchronous>, transform_indices = @transform_4, window_bounds = array<i64: 16, 1>}, {transform_indices = @transform_5, window_bounds = array<i64: 1, 16, 64>}]} {
    %cst = arith.constant 0.000000e+00 : f32
    %0 = vector.broadcast %cst : f32 to vector<18x18x8xf32>
    %c0 = arith.constant 0 : index
    %c0_0 = arith.constant 0 : index
    %c0_1 = arith.constant 0 : index
    %1 = vector.load %arg7[%c0, %c0_0, %c0_1] : memref<18x18x8xf32, #tpu.memory_space<vmem>>, vector<18x18x8xf32>
    tpu.vector_store %arg7[%c0, %c0_0, %c0_1], %0 {strides = array<i32>} : memref<18x18x8xf32, #tpu.memory_space<vmem>>, vector<18x18x8xf32>,
    %c0_2 = arith.constant 0 : index
    %c0_3 = arith.constant 0 : index
    %c0_4 = arith.constant 0 : index
    %c0_5 = arith.constant 0 : index
    %2 = vector.load %arg1[%c0_2, %c0_3, %c0_4, %c0_5] : memref<1x16x16x8xf32, #tpu.memory_space<vmem>>, vector<1x16x16x8xf32>
    %3 = vector.shape_cast %2 : vector<1x16x16x8xf32> to vector<16x16x8xf32>
    %c1 = arith.constant 1 : index
    %c1_6 = arith.constant 1 : index
    %c0_7 = arith.constant 0 : index
    %4 = vector.load %arg7[%c1, %c1_6, %c0_7] : memref<18x18x8xf32, #tpu.memory_space<vmem>>, vector<16x16x8xf32>
    tpu.vector_store %arg7[%c1, %c1_6, %c0_7], %3 {strides = array<i32>} : memref<18x18x8xf32, #tpu.memory_space<vmem>>, vector<16x16x8xf32>,
    %cst_8 = arith.constant 0.000000e+00 : f32
    %5 = vector.broadcast %cst_8 : f32 to vector<8x8x8xf32>
    %c0_9 = arith.constant 0 : index
    %c0_10 = arith.constant 0 : index
    %c0_11 = arith.constant 0 : index
    %6 = tpu.strided_load %arg7[%c0_9, %c0_10, %c0_11] {strides = array<i32: 2, 2, 1>} : memref<18x18x8xf32, #tpu.memory_space<vmem>>, vector<8x8x8xf32>
    %c0_12 = arith.constant 0 : index
    %c0_13 = arith.constant 0 : index
    %7 = vector.load %arg2[%c0_12, %c0_13] : memref<9x8xf32, #tpu.memory_space<vmem>>, vector<1x8xf32>
    %8 = vector.shape_cast %7 : vector<1x8xf32> to vector<8xf32>
    %9 = vector.shape_cast %8 : vector<8xf32> to vector<1x1x8xf32>
    %10 = vector.broadcast %9 : vector<1x1x8xf32> to vector<8x8x8xf32>
    %11 = arith.mulf %6, %10 : vector<8x8x8xf32>
    %12 = arith.addf %5, %11 : vector<8x8x8xf32>
    %c0_14 = arith.constant 0 : index
    %c1_15 = arith.constant 1 : index
    %c0_16 = arith.constant 0 : index
    %13 = tpu.strided_load %arg7[%c0_14, %c1_15, %c0_16] {strides = array<i32: 2, 2, 1>} : memref<18x18x8xf32, #tpu.memory_space<vmem>>, vector<8x8x8xf32>
    %c1_17 = arith.constant 1 : index
    %c0_18 = arith.constant 0 : index
    %14 = vector.load %arg2[%c1_17, %c0_18] : memref<9x8xf32, #tpu.memory_space<vmem>>, vector<1x8xf32>
    %15 = vector.shape_cast %14 : vector<1x8xf32> to vector<8xf32>
    %16 = vector.shape_cast %15 : vector<8xf32> to vector<1x1x8xf32>
    %17 = vector.broadcast %16 : vector<1x1x8xf32> to vector<8x8x8xf32>
    %18 = arith.mulf %13, %17 : vector<8x8x8xf32>
    %19 = arith.addf %12, %18 : vector<8x8x8xf32>
    %c0_19 = arith.constant 0 : index
    %c2 = arith.constant 2 : index
    %c0_20 = arith.constant 0 : index
    %20 = tpu.strided_load %arg7[%c0_19, %c2, %c0_20] {strides = array<i32: 2, 2, 1>} : memref<18x18x8xf32, #tpu.memory_space<vmem>>, vector<8x8x8xf32>
    %c2_21 = arith.constant 2 : index
    %c0_22 = arith.constant 0 : index
    %21 = vector.load %arg2[%c2_21, %c0_22] : memref<9x8xf32, #tpu.memory_space<vmem>>, vector<1x8xf32>
    %22 = vector.shape_cast %21 : vector<1x8xf32> to vector<8xf32>
    %23 = vector.shape_cast %22 : vector<8xf32> to vector<1x1x8xf32>
    %24 = vector.broadcast %23 : vector<1x1x8xf32> to vector<8x8x8xf32>
    %25 = arith.mulf %20, %24 : vector<8x8x8xf32>
    %26 = arith.addf %19, %25 : vector<8x8x8xf32>
    %c1_23 = arith.constant 1 : index
    %c0_24 = arith.constant 0 : index
    %c0_25 = arith.constant 0 : index
    %27 = tpu.strided_load %arg7[%c1_23, %c0_24, %c0_25] {strides = array<i32: 2, 2, 1>} : memref<18x18x8xf32, #tpu.memory_space<vmem>>, vector<8x8x8xf32>
    %c3 = arith.constant 3 : index
    %c0_26 = arith.constant 0 : index
    %28 = vector.load %arg2[%c3, %c0_26] : memref<9x8xf32, #tpu.memory_space<vmem>>, vector<1x8xf32>
    %29 = vector.shape_cast %28 : vector<1x8xf32> to vector<8xf32>
    %30 = vector.shape_cast %29 : vector<8xf32> to vector<1x1x8xf32>
    %31 = vector.broadcast %30 : vector<1x1x8xf32> to vector<8x8x8xf32>
    %32 = arith.mulf %27, %31 : vector<8x8x8xf32>
    %33 = arith.addf %26, %32 : vector<8x8x8xf32>
    %c1_27 = arith.constant 1 : index
    %c1_28 = arith.constant 1 : index
    %c0_29 = arith.constant 0 : index
    %34 = tpu.strided_load %arg7[%c1_27, %c1_28, %c0_29] {strides = array<i32: 2, 2, 1>} : memref<18x18x8xf32, #tpu.memory_space<vmem>>, vector<8x8x8xf32>
    %c4 = arith.constant 4 : index
    %c0_30 = arith.constant 0 : index
    %35 = vector.load %arg2[%c4, %c0_30] : memref<9x8xf32, #tpu.memory_space<vmem>>, vector<1x8xf32>
    %36 = vector.shape_cast %35 : vector<1x8xf32> to vector<8xf32>
    %37 = vector.shape_cast %36 : vector<8xf32> to vector<1x1x8xf32>
    %38 = vector.broadcast %37 : vector<1x1x8xf32> to vector<8x8x8xf32>
    %39 = arith.mulf %34, %38 : vector<8x8x8xf32>
    %40 = arith.addf %33, %39 : vector<8x8x8xf32>
    %c1_31 = arith.constant 1 : index
    %c2_32 = arith.constant 2 : index
    %c0_33 = arith.constant 0 : index
    %41 = tpu.strided_load %arg7[%c1_31, %c2_32, %c0_33] {strides = array<i32: 2, 2, 1>} : memref<18x18x8xf32, #tpu.memory_space<vmem>>, vector<8x8x8xf32>
    %c5 = arith.constant 5 : index
    %c0_34 = arith.constant 0 : index
    %42 = vector.load %arg2[%c5, %c0_34] : memref<9x8xf32, #tpu.memory_space<vmem>>, vector<1x8xf32>
    %43 = vector.shape_cast %42 : vector<1x8xf32> to vector<8xf32>
    %44 = vector.shape_cast %43 : vector<8xf32> to vector<1x1x8xf32>
    %45 = vector.broadcast %44 : vector<1x1x8xf32> to vector<8x8x8xf32>
    %46 = arith.mulf %41, %45 : vector<8x8x8xf32>
    %47 = arith.addf %40, %46 : vector<8x8x8xf32>
    %c2_35 = arith.constant 2 : index
    %c0_36 = arith.constant 0 : index
    %c0_37 = arith.constant 0 : index
    %48 = tpu.strided_load %arg7[%c2_35, %c0_36, %c0_37] {strides = array<i32: 2, 2, 1>} : memref<18x18x8xf32, #tpu.memory_space<vmem>>, vector<8x8x8xf32>
    %c6 = arith.constant 6 : index
    %c0_38 = arith.constant 0 : index
    %49 = vector.load %arg2[%c6, %c0_38] : memref<9x8xf32, #tpu.memory_space<vmem>>, vector<1x8xf32>
    %50 = vector.shape_cast %49 : vector<1x8xf32> to vector<8xf32>
    %51 = vector.shape_cast %50 : vector<8xf32> to vector<1x1x8xf32>
    %52 = vector.broadcast %51 : vector<1x1x8xf32> to vector<8x8x8xf32>
    %53 = arith.mulf %48, %52 : vector<8x8x8xf32>
    %54 = arith.addf %47, %53 : vector<8x8x8xf32>
    %c2_39 = arith.constant 2 : index
    %c1_40 = arith.constant 1 : index
    %c0_41 = arith.constant 0 : index
    %55 = tpu.strided_load %arg7[%c2_39, %c1_40, %c0_41] {strides = array<i32: 2, 2, 1>} : memref<18x18x8xf32, #tpu.memory_space<vmem>>, vector<8x8x8xf32>
    %c7 = arith.constant 7 : index
    %c0_42 = arith.constant 0 : index
    %56 = vector.load %arg2[%c7, %c0_42] : memref<9x8xf32, #tpu.memory_space<vmem>>, vector<1x8xf32>
    %57 = vector.shape_cast %56 : vector<1x8xf32> to vector<8xf32>
    %58 = vector.shape_cast %57 : vector<8xf32> to vector<1x1x8xf32>
    %59 = vector.broadcast %58 : vector<1x1x8xf32> to vector<8x8x8xf32>
    %60 = arith.mulf %55, %59 : vector<8x8x8xf32>
    %61 = arith.addf %54, %60 : vector<8x8x8xf32>
    %c2_43 = arith.constant 2 : index
    %c2_44 = arith.constant 2 : index
    %c0_45 = arith.constant 0 : index
    %62 = tpu.strided_load %arg7[%c2_43, %c2_44, %c0_45] {strides = array<i32: 2, 2, 1>} : memref<18x18x8xf32, #tpu.memory_space<vmem>>, vector<8x8x8xf32>
    %c8 = arith.constant 8 : index
    %c0_46 = arith.constant 0 : index
    %63 = vector.load %arg2[%c8, %c0_46] : memref<9x8xf32, #tpu.memory_space<vmem>>, vector<1x8xf32>
    %64 = vector.shape_cast %63 : vector<1x8xf32> to vector<8xf32>
    %65 = vector.shape_cast %64 : vector<8xf32> to vector<1x1x8xf32>
    %66 = vector.broadcast %65 : vector<1x1x8xf32> to vector<8x8x8xf32>
    %67 = arith.mulf %62, %66 : vector<8x8x8xf32>
    %68 = arith.addf %61, %67 : vector<8x8x8xf32>
    %c0_47 = arith.constant 0 : index
    %c0_48 = arith.constant 0 : index
    %69 = vector.load %arg3[%c0_47, %c0_48] : memref<1x8xf32, #tpu.memory_space<vmem>>, vector<1x8xf32>
    %70 = vector.shape_cast %69 : vector<1x8xf32> to vector<8xf32>
    %71 = vector.shape_cast %70 : vector<8xf32> to vector<1x1x8xf32>
    %72 = vector.broadcast %71 : vector<1x1x8xf32> to vector<8x8x8xf32>
    %73 = arith.addf %68, %72 : vector<8x8x8xf32>
    %cst_49 = arith.constant 0.000000e+00 : f32
    %74 = vector.broadcast %cst_49 : f32 to vector<8x8x8xf32>
    %75 = arith.maximumf %73, %74 : vector<8x8x8xf32>
    %76 = vector.shape_cast %75 : vector<8x8x8xf32> to vector<64x8xf32>
    %c0_50 = arith.constant 0 : index
    %c0_51 = arith.constant 0 : index
    %77 = vector.load %arg4[%c0_50, %c0_51] : memref<16x8xf32, #tpu.memory_space<vmem>>, vector<16x8xf32>
    %cst_52 = arith.constant dense<0.000000e+00> : vector<16x64xf32>
    %78 = tpu.matmul %77, %76, %cst_52 {dimension_numbers = #tpu.dot_dimension_numbers<[1], [1], [0], [0], [0, 0, 1, 0], [], []>} : vector<16x8xf32>, vector<64x8xf32>, vector<16x64xf32> -> vector<16x64xf32>
    %c0_53 = arith.constant 0 : index
    %c0_54 = arith.constant 0 : index
    %79 = vector.load %arg5[%c0_53, %c0_54] : memref<16x1xf32, #tpu.memory_space<vmem>>, vector<16x1xf32>
    %80 = vector.broadcast %79 : vector<16x1xf32> to vector<16x64xf32>
    %81 = arith.addf %78, %80 : vector<16x64xf32>
    %cst_55 = arith.constant 0.000000e+00 : f32
    %82 = vector.broadcast %cst_55 : f32 to vector<16x64xf32>
    %83 = arith.maximumf %81, %82 : vector<16x64xf32>
    %c0_56 = arith.constant 0 : index
    %c0_57 = arith.constant 0 : index
    %c0_58 = arith.constant 0 : index
    %84 = vector.load %arg6[%c0_56, %c0_57, %c0_58] : memref<1x16x64xf32, #tpu.memory_space<vmem>>, vector<1x16x64xf32>
    %85 = vector.shape_cast %84 : vector<1x16x64xf32> to vector<16x64xf32>
    %86 = vector.shape_cast %83 : vector<16x64xf32> to vector<1x16x64xf32>
    tpu.vector_store %arg6[%c0_56, %c0_57, %c0_58], %86 {strides = array<i32>} : memref<1x16x64xf32, #tpu.memory_space<vmem>>, vector<1x16x64xf32>,
    return
  }
  func.func @transform_0(%arg0: i32) -> (i32, i32, i32, i32) {
    %c0_i32 = arith.constant 0 : i32
    %c0_i32_0 = arith.constant 0 : i32
    %c0_i32_1 = arith.constant 0 : i32
    %c0_i32_2 = arith.constant 0 : i32
    return %arg0, %c0_i32, %c0_i32_0, %c0_i32_1 : i32, i32, i32, i32
  }
  func.func @transform_1(%arg0: i32) -> (i32, i32) {
    %c0_i32 = arith.constant 0 : i32
    %c0_i32_0 = arith.constant 0 : i32
    %c0_i32_1 = arith.constant 0 : i32
    return %c0_i32, %c0_i32_0 : i32, i32
  }
  func.func @transform_2(%arg0: i32) -> (i32, i32) {
    %c0_i32 = arith.constant 0 : i32
    %c0_i32_0 = arith.constant 0 : i32
    %c0_i32_1 = arith.constant 0 : i32
    return %c0_i32, %c0_i32_0 : i32, i32
  }
  func.func @transform_3(%arg0: i32) -> (i32, i32) {
    %c0_i32 = arith.constant 0 : i32
    %c0_i32_0 = arith.constant 0 : i32
    %c0_i32_1 = arith.constant 0 : i32
    return %c0_i32, %c0_i32_0 : i32, i32
  }
  func.func @transform_4(%arg0: i32) -> (i32, i32) {
    %c0_i32 = arith.constant 0 : i32
    %c0_i32_0 = arith.constant 0 : i32
    %c0_i32_1 = arith.constant 0 : i32
    return %c0_i32, %c0_i32_0 : i32, i32
  }
  func.func @transform_5(%arg0: i32) -> (i32, i32, i32) {
    %c0_i32 = arith.constant 0 : i32
    %c0_i32_0 = arith.constant 0 : i32
    %c0_i32_1 = arith.constant 0 : i32
    return %arg0, %c0_i32, %c0_i32_0 : i32, i32, i32
  }
}

</mosaic_0001>

<bundles_post_ra>
// kernel: tpu_custom_call.1
= control target key start
LH: loop header
LB: loop body
LE: loop exit
PB: predicated region body
PF: predicated region fallthrough
CT: control target
= control target key end

     0   :  { %10 = vsyncpa [#allocation4], 0  ;;  %s1586_s0 = inlined_call_operand.vmem [shape: f32[2,16,16,8], index: 0, kind: input, shape index: {}]   ;;  %s1587_s1 = inlined_call_operand.vmem [shape: f32[9,8], index: 1, kind: input, shape index: {}]   ;;  %s1588_s2 = inlined_call_operand.vmem [shape: f32[1,8], index: 2, kind: input, shape index: {}]   ;;  %s1589_s3 = inlined_call_operand.vmem [shape: f32[16,8], index: 3, kind: input, shape index: {}]   ;;  %s1590_s4 = inlined_call_operand.vmem [shape: f32[16,1], index: 4, kind: input, shape index: {}]   ;;  %s1591_s5 = inlined_call_operand.hbm [shape: f32[2,16,64], index: 5, kind: output, shape index: {}]  }
   0x1   :  { %12 = vsyncpa [#allocation4 + $0x1], 0  ;;  %s1174_s18 = smov 0   ;;  %s1176_s19 = smov 0  }
   0x2   :  { %s1178_s20 = smov 0   ;;  %s1180_s21 = smov 0  }
   0x3 LB: > { %s1195_s22 = sadd.s32 4294967295, %s1137_s21   ;;  %s944_s23 = sadd.s32 4294967294, %s1137_s21   ;;  %s1137_s21 = sphi %s1180_s21, %s1599_s21   ;;  %s1133_s20 = sphi %s1178_s20, %s1598_s20   ;;  %s1129_s19 = sphi %s1176_s19, %s1597_s19   ;;  %s1125_s18 = sphi %s1174_s18, %s1596_s18  }
   0x4   : > { %s1199_s24 = sadd.s32 1, %s1137_s21   ;;  %s135_s25 = sadd.s32 1, %s1133_s20 }
   0x5   : > { %s132_s26 = ssub.s32 %s1137_s21, %s1199_s24  ;;  %p145_p0 = scmp.ne.s32.totalorder %s1133_s20, %s1129_s19 }
   0x6   : > { %p133_p1 = scmp.eq.s32.totalorder %s132_s26, 0  ;;  %p146_p2 = scmp.eq.s32.totalorder %s1195_s22, 1 }
   0x7   : > { %p151_p3 = scmp.ne.s32.totalorder %s1129_s19, %s1125_s18  ;;  %p152_p4 = scmp.eq.s32.totalorder %s944_s23, 1 }
   0x8   : > { %s1210_s27 = scalar_select %p133_p1, %s1133_s20, %s135_s25  }
   0x9   : > { %p1212_p5 = por %p146_p2, %p145_p0  ;;  %p1216_p6 = por %p152_p4, %p151_p3 }
   0xa   : > { %p947_p7 = scmp.ge.s32.totalorder %s1137_s21, 1  ;;  %p190_p8 = scmp.lt.s32.totalorder %s1137_s21, 3 }
   0xc   : > { %p191_p9 = pnand %p947_p7, %p190_p8 }
   0xd   : > { %p218_p10 = scmp.lt.s32.totalorder (!%p191_p9), %s1195_s22, 1  ;;  %vm223_vm0 = vcmask (!%p191_p9), 64512   ;;  %vm226_vm1 = vcmask (!%p191_p9), 58368   ;;  %v1139_v0 = vmov (!%p191_p9), 0.0   ;;  %v1140_v1 = vmov (!%p191_p9), 0   ;;  %v698_v3 = vld [vmem:[%s1589_s3] sm:$0xff] (!%p191_p9) }
   0xe   : > { %194 = sbr.rel (%p191_p9) target bundleno = 341 (0x155), region = 40  ;;  %224 = vst.msk [vmem:[#allocation2] sm:$0xff] (!%p191_p9), %vm223_vm0, %v1139_v0  ;;  %225 = vst.msk [vmem:[#allocation2 + $0x8] sm:$0xff] (!%p191_p9), %vm223_vm0, %v1139_v0  ;;  %1074 = vset.pattern.permute.xlu0 (!%p191_p9), %v1140_v1  ;;  %v1280_v2 = vld [vmem:[%s1587_s1] ss:$0 sm:$0xff] (!%p191_p9)  ;;  %1004 = vmatprep.mubr.msk.f32.mxu0 (!%p191_p9), %vm223_vm0, %v698_v3  ;;  %v701_v7 = vld [vmem:[%s1590_s4 + $0x8] sm:$0xff] (!%p191_p9) }
   0xf   : > { %227 = vst.msk [vmem:[#allocation2 + $0x10] sm:$0x3] (!%p191_p9), %vm226_vm1, %v1139_v0  ;;  %230 = vst.msk [vmem:[#allocation2 + $0x28] sm:$0x3] (!%p191_p9), %vm226_vm1, %v1139_v0  ;;  %v1293_v4 = vld [vmem:[%s1587_s1 + $0x1] ss:$0 sm:$0xff] (!%p191_p9) }
  0x10   : > { %228 = vst.msk [vmem:[#allocation2 + $0x18] sm:$0xff] (!%p191_p9), %vm223_vm0, %v1139_v0  ;;  %229 = vst.msk [vmem:[#allocation2 + $0x20] sm:$0xff] (!%p191_p9), %vm223_vm0, %v1139_v0  ;;  %v1298_v5 = vld [vmem:[%s1587_s1 + $0x2] ss:$0 sm:$0xff] (!%p191_p9)  ;;  %v1330_v23 = vld [vmem:[%s1587_s1 + $0x3] ss:$0 sm:$0xff] (!%p191_p9) }
  0x11   : > { %231 = vst.msk [vmem:[#allocation2 + $0x30] sm:$0xff] (!%p191_p9), %vm223_vm0, %v1139_v0  ;;  %232 = vst.msk [vmem:[#allocation2 + $0x38] sm:$0xff] (!%p191_p9), %vm223_vm0, %v1139_v0  ;;  %v700_v6 = vld [vmem:[%s1590_s4] sm:$0xff] (!%p191_p9)  ;;  %v1377_v45 = vld [vmem:[%s1587_s1 + $0x8] ss:$0 sm:$0xff] (!%p191_p9)  ;;  %s977_s10 = sshll.u32 (!%p191_p9), %s1195_s22, 8 }
  0x12   : > { %233 = vst.msk [vmem:[#allocation2 + $0x40] sm:$0x3] (!%p191_p9), %vm226_vm1, %v1139_v0  ;;  %236 = vst.msk [vmem:[#allocation2 + $0x58] sm:$0x3] (!%p191_p9), %vm226_vm1, %v1139_v0  ;;  %704 = vperm.xlu0 (!%p191_p9), %1074, %v700_v6   ;;  %v1335_v24 = vld [vmem:[%s1587_s1 + $0x4] ss:$0 sm:$0xff] (!%p191_p9)  ;;  %s1543_s14 = scalar_lea.hbm (!%p191_p9), %s1591_s5, %s977_s10 }
  0x13   : > { %234 = vst.msk [vmem:[#allocation2 + $0x48] sm:$0xff] (!%p191_p9), %vm223_vm0, %v1139_v0  ;;  %235 = vst.msk [vmem:[#allocation2 + $0x50] sm:$0xff] (!%p191_p9), %vm223_vm0, %v1139_v0  ;;  %v1344_v28 = vld [vmem:[%s1587_s1 + $0x5] ss:$0 sm:$0xff] (!%p191_p9)  ;;  %v1361_v36 = vld [vmem:[%s1587_s1 + $0x6] ss:$0 sm:$0xff] (!%p191_p9) }
  0x14   : > { %237 = vst.msk [vmem:[#allocation2 + $0x60] sm:$0xff] (!%p191_p9), %vm223_vm0, %v1139_v0  ;;  %238 = vst.msk [vmem:[#allocation2 + $0x68] sm:$0xff] (!%p191_p9), %vm223_vm0, %v1139_v0  ;;  %v1366_v37 = vld [vmem:[%s1587_s1 + $0x7] ss:$0 sm:$0xff] (!%p191_p9)  ;;  %vm819_vm3 = vcmask (!%p191_p9), 523264   ;;  %s1141_s16 = smov (!%p191_p9), [#allocation3]  }
  0x15   : > { %239 = vst.msk [vmem:[#allocation2 + $0x70] sm:$0x3] %vm226_vm1, %v1139_v0  ;;  %242 = vst.msk [vmem:[#allocation2 + $0x88] sm:$0x3] %vm226_vm1, %v1139_v0  ;;  %s219_s30 = scalar_select %p218_p10, %s1195_s22, 1 }
  0x16   : > { %240 = vst.msk [vmem:[#allocation2 + $0x78] sm:$0xff] %vm223_vm0, %v1139_v0  ;;  %241 = vst.msk [vmem:[#allocation2 + $0x80] sm:$0xff] %vm223_vm0, %v1139_v0  ;;  %v344_v16 = vld [vmem:[#allocation2] ss:$2 sm:$0xff]  ;;  %v381_v18 = vld [vmem:[#allocation2 + $0x1] ss:$2 sm:$0xff]  ;;  %709 = vperm.xlu0 %1074, %v701_v7  }
  0x17   : > { %243 = vst.msk [vmem:[#allocation2 + $0x90] sm:$0xff] %vm223_vm0, %v1139_v0  ;;  %244 = vst.msk [vmem:[#allocation2 + $0x98] sm:$0xff] %vm223_vm0, %v1139_v0  ;;  %s976_s6 = sshll.u32 %s219_s30, 8  ;;  %v364_v17 = vmul.f32 %v1280_v2, %v344_v16  ;;  %v418_v19 = vld [vmem:[#allocation2 + $0x2] ss:$2 sm:$0xff]  ;;  %v401_v21 = vmul.f32 %v1293_v4, %v381_v18  ;;  %s1079_s17 = sshll.u32 %s1141_s16, 4  ;;  %s1080_s17 = int_to_ptr.vmem [resolvable:$false] %s1079_s17 }
  0x18   : > { %245 = vst.msk [vmem:[#allocation2 + $0xa0] sm:$0x3] %vm226_vm1, %v1139_v0  ;;  %248 = vst.msk [vmem:[#allocation2 + $0xb8] sm:$0x3] %vm226_vm1, %v1139_v0  ;;  %s1288_s13 = scalar_lea.vmem %s1586_s0, %s976_s6  ;;  %v438_v22 = vmul.f32 %v1298_v5, %v418_v19  ;;  %s215_s6 = sand.u32 1, %s1129_s19  }
  0x19   : > { %246 = vst.msk [vmem:[#allocation2 + $0xa8] sm:$0xff] %vm223_vm0, %v1139_v0  ;;  %247 = vst.msk [vmem:[#allocation2 + $0xb0] sm:$0xff] %vm223_vm0, %v1139_v0  ;;  %v279_v8 = vld [vmem:[%s1288_s13] sm:$0xff]  ;;  %v280_v9 = vld [vmem:[%s1288_s13 + $0x8] sm:$0xff]  ;;  %v409_v32 = vadd.f32 %v401_v21, %v364_v17  ;;  %s948_s7 = sshll.u32 %s215_s6, 4  ;;  %s1545_s15 = scalar_lea.sflag [#allocation4], %s215_s6 }
  0x1a   : > { %249 = vst.msk [vmem:[#allocation2 + $0xc0] sm:$0xff] %vm223_vm0, %v1139_v0  ;;  %250 = vst.msk [vmem:[#allocation2 + $0xc8] sm:$0xff] %vm223_vm0, %v1139_v0  ;;  %v281_v10 = vld [vmem:[%s1288_s13 + $0x10] sm:$0xff]  ;;  %v282_v11 = vld [vmem:[%s1288_s13 + $0x18] sm:$0xff]  ;;  %s217_s8 = scalar_lea.vmem [#allocation3], %s948_s7  ;;  %s1081_s23 = scalar_lea.vmem %s1080_s17, 512 }
  0x1b   : > { %251 = vst.msk [vmem:[#allocation2 + $0xd0] sm:$0x3] %vm226_vm1, %v1139_v0  ;;  %254 = vst.msk [vmem:[#allocation2 + $0xe8] sm:$0x3] %vm226_vm1, %v1139_v0  ;;  %v283_v12 = vld [vmem:[%s1288_s13 + $0x20] sm:$0xff]  ;;  %v284_v13 = vld [vmem:[%s1288_s13 + $0x28] sm:$0xff]  ;;  %v446_v41 = vadd.f32 %v438_v22, %v409_v32 }
  0x1c   : > { %252 = vst.msk [vmem:[#allocation2 + $0xd8] sm:$0xff] %vm223_vm0, %v1139_v0  ;;  %253 = vst.msk [vmem:[#allocation2 + $0xe0] sm:$0xff] %vm223_vm0, %v1139_v0  ;;  %v285_v14 = vld [vmem:[%s1288_s13 + $0x30] sm:$0xff]  ;;  %v286_v15 = vld [vmem:[%s1288_s13 + $0x38] sm:$0xff]  ;;  %s836_s9 = sshll.u32 %s217_s8, 4  ;;  %s1538_s9 = int_to_ptr.vmem [resolvable:$true] %s836_s9 }
  0x1d   : > { %255 = vst.msk [vmem:[#allocation2 + $0xf0] sm:$0xff] %vm223_vm0, %v1139_v0  ;;  %256 = vst.msk [vmem:[#allocation2 + $0xf8] sm:$0xff] %vm223_vm0, %v1139_v0  ;;  %v287_v20 = vld [vmem:[%s1288_s13 + $0x40] sm:$0xff]  ;;  %v288_v25 = vld [vmem:[%s1288_s13 + $0x48] sm:$0xff]  ;;  %s1075_s22 = scalar_lea.vmem %s1538_s9, 256  ;;  %p1082_p0 = scmp.lt.s32.totalorder %s1538_s9, %s1080_s17 }
  0x1e   : > { %257 = vst.msk [vmem:[#allocation2 + $0x100] sm:$0x3] %vm226_vm1, %v1139_v0  ;;  %260 = vst.msk [vmem:[#allocation2 + $0x118] sm:$0x3] %vm226_vm1, %v1139_v0  ;;  %v289_v26 = vld [vmem:[%s1288_s13 + $0x50] sm:$0xff]  ;;  %v290_v27 = vld [vmem:[%s1288_s13 + $0x58] sm:$0xff]  ;;  %p1076_p11 = scmp.ne.s32.totalorder %s1538_s9, %s1075_s22  ;;  %p1083_p1 = scmp.lt.s32.totalorder %s1081_s23, %s1075_s22 }
  0x1f   : > { %258 = vst.msk [vmem:[#allocation2 + $0x108] sm:$0xff] %vm223_vm0, %v1139_v0  ;;  %259 = vst.msk [vmem:[#allocation2 + $0x110] sm:$0xff] %vm223_vm0, %v1139_v0  ;;  %v291_v29 = vld [vmem:[%s1288_s13 + $0x60] sm:$0xff]  ;;  %v292_v30 = vld [vmem:[%s1288_s13 + $0x68] sm:$0xff] }
  0x20   : > { %261 = vst.msk [vmem:[#allocation2 + $0x120] sm:$0xff] %vm223_vm0, %v1139_v0  ;;  %262 = vst.msk [vmem:[#allocation2 + $0x128] sm:$0xff] %vm223_vm0, %v1139_v0  ;;  %v293_v31 = vld [vmem:[%s1288_s13 + $0x70] sm:$0xff]  ;;  %v294_v33 = vld [vmem:[%s1288_s13 + $0x78] sm:$0xff]  ;;  %p1077_p12 = pnand %p1076_p11, %p1212_p5  ;;  %p1084_p2 = por %p1083_p1, %p1082_p0 }
  0x21   : > { %263 = vst.msk [vmem:[#allocation2 + $0x130] sm:$0x3] %vm226_vm1, %v1139_v0  ;;  %266 = vst.msk [vmem:[#allocation2 + $0x148] sm:$0x3] %vm226_vm1, %v1139_v0  ;;  %v295_v34 = vld [vmem:[%s1288_s13 + $0x80] sm:$0xff]  ;;  %v296_v35 = vld [vmem:[%s1288_s13 + $0x88] sm:$0xff] }
  0x22   : > { %264 = vst.msk [vmem:[#allocation2 + $0x138] sm:$0xff] %vm223_vm0, %v1139_v0  ;;  %265 = vst.msk [vmem:[#allocation2 + $0x140] sm:$0xff] %vm223_vm0, %v1139_v0  ;;  %v297_v38 = vld [vmem:[%s1288_s13 + $0x90] sm:$0xff]  ;;  %v298_v39 = vld [vmem:[%s1288_s13 + $0x98] sm:$0xff]  ;;  %p1078_p13 = pneg %p1077_p12 }
  0x23   : > { %267 = vst.msk [vmem:[#allocation2 + $0x150] sm:$0xff] %vm223_vm0, %v1139_v0  ;;  %268 = vst.msk [vmem:[#allocation2 + $0x158] sm:$0xff] %vm223_vm0, %v1139_v0  ;;  %v299_v40 = vld [vmem:[%s1288_s13 + $0xa0] sm:$0xff] }
  0x24   : > { %269 = vst.msk [vmem:[#allocation2 + $0x160] sm:$0x3] %vm226_vm1, %v1139_v0  ;;  %272 = vst.msk [vmem:[#allocation2 + $0x178] sm:$0x3] %vm226_vm1, %v1139_v0  ;;  %p1085_p3 = pnand %p1084_p2, %p1078_p13 }
  0x25   : > { %270 = vst.msk [vmem:[#allocation2 + $0x168] sm:$0xff] %vm223_vm0, %v1139_v0  ;;  %271 = vst.msk [vmem:[#allocation2 + $0x170] sm:$0xff] %vm223_vm0, %v1139_v0 }
  0x26   : > { %273 = vst.msk [vmem:[#allocation2 + $0x180] sm:$0xff] %vm223_vm0, %v1139_v0  ;;  %274 = vst.msk [vmem:[#allocation2 + $0x188] sm:$0xff] %vm223_vm0, %v1139_v0 }
  0x27   : > { %275 = vst.msk [vmem:[#allocation2 + $0x190] sm:$0x3] %vm226_vm1, %v1139_v0  ;;  %vm1483_vm2 = vmpackc.low %vm223_vm0, %vm223_vm0 }
  0x28   : > { %312 = vst.msk [vmem:[#allocation2 + $0x19] sm:$0xff] %vm223_vm0, %v279_v8  ;;  %313 = vst.msk [vmem:[#allocation2 + $0x21] sm:$0xff] %vm223_vm0, %v280_v9 }
  0x29   : > { %314 = vst.msk [vmem:[#allocation2 + $0x31] sm:$0xff] %vm223_vm0, %v281_v10  ;;  %315 = vst.msk [vmem:[#allocation2 + $0x39] sm:$0xff] %vm223_vm0, %v282_v11 }
  0x2a   : > { %316 = vst.msk [vmem:[#allocation2 + $0x49] sm:$0xff] %vm223_vm0, %v283_v12  ;;  %317 = vst.msk [vmem:[#allocation2 + $0x51] sm:$0xff] %vm223_vm0, %v284_v13 }
  0x2b   : > { %318 = vst.msk [vmem:[#allocation2 + $0x61] sm:$0xff] %vm223_vm0, %v285_v14  ;;  %319 = vst.msk [vmem:[#allocation2 + $0x69] sm:$0xff] %vm223_vm0, %v286_v15 }
  0x2c   : > { %320 = vst.msk [vmem:[#allocation2 + $0x79] sm:$0xff] %vm223_vm0, %v287_v20  ;;  %321 = vst.msk [vmem:[#allocation2 + $0x81] sm:$0xff] %vm223_vm0, %v288_v25 }
  0x2d   : > { %322 = vst.msk [vmem:[#allocation2 + $0x91] sm:$0xff] %vm223_vm0, %v289_v26  ;;  %323 = vst.msk [vmem:[#allocation2 + $0x99] sm:$0xff] %vm223_vm0, %v290_v27 }
  0x2e   : > { %324 = vst.msk [vmem:[#allocation2 + $0xa9] sm:$0xff] %vm223_vm0, %v291_v29  ;;  %325 = vst.msk [vmem:[#allocation2 + $0xb1] sm:$0xff] %vm223_vm0, %v292_v30 }
  0x2f   : > { %326 = vst.msk [vmem:[#allocation2 + $0xc1] sm:$0xff] %vm223_vm0, %v293_v31  ;;  %327 = vst.msk [vmem:[#allocation2 + $0xc9] sm:$0xff] %vm223_vm0, %v294_v33  ;;  %v454_v42 = vld [vmem:[#allocation2 + $0x18] ss:$2 sm:$0xff]  ;;  %v491_v43 = vld [vmem:[#allocation2 + $0x19] ss:$2 sm:$0xff] }
  0x30   : > { %328 = vst.msk [vmem:[#allocation2 + $0xd9] sm:$0xff] %vm223_vm0, %v295_v34  ;;  %329 = vst.msk [vmem:[#allocation2 + $0xe1] sm:$0xff] %vm223_vm0, %v296_v35  ;;  %v528_v44 = vld [vmem:[#allocation2 + $0x1a] ss:$2 sm:$0xff]  ;;  %v383_v47 = vld [vmem:[#allocation2 + $0x31] ss:$2 sm:$0xff]  ;;  %v474_v49 = vmul.f32 %v1330_v23, %v454_v42  ;;  %v511_v50 = vmul.f32 %v1335_v24, %v491_v43 }
  0x31   : > { %330 = vst.msk [vmem:[#allocation2 + $0xf1] sm:$0xff] %vm223_vm0, %v297_v38  ;;  %331 = vst.msk [vmem:[#allocation2 + $0xf9] sm:$0xff] %vm223_vm0, %v298_v39  ;;  %v346_v46 = vld [vmem:[#allocation2 + $0x30] ss:$2 sm:$0xff]  ;;  %v402_v52 = vmul.f32 %v1293_v4, %v383_v47  ;;  %v493_v55 = vld [vmem:[#allocation2 + $0x49] ss:$2 sm:$0xff]  ;;  %v548_v57 = vmul.f32 %v1344_v28, %v528_v44 }
  0x32   : > { %332 = vst.msk [vmem:[#allocation2 + $0x109] sm:$0xff] %vm223_vm0, %v299_v40  ;;  %v420_v48 = vld [vmem:[#allocation2 + $0x32] ss:$2 sm:$0xff]  ;;  %v365_v51 = vmul.f32 %v1280_v2, %v346_v46  ;;  %v482_v59 = vadd.f32 %v474_v49, %v446_v41  ;;  %v512_v60 = vmul.f32 %v1335_v24, %v493_v55  ;;  %v602_v0 = vld [vmem:[#allocation2 + $0x31] ss:$2 sm:$0xff] }
  0x33   : > { %v439_v53 = vmul.f32 %v1298_v5, %v420_v48  ;;  %v456_v54 = vld [vmem:[#allocation2 + $0x48] ss:$2 sm:$0xff]  ;;  %v604_v7 = vld [vmem:[#allocation2 + $0x61] ss:$2 sm:$0xff]  ;;  %v622_v8 = vmul.f32 %v1366_v37, %v602_v0  ;;  %v458_v32 = vld [vmem:[#allocation2 + $0x78] ss:$2 sm:$0xff] }
  0x34   : > { %v530_v56 = vld [vmem:[#allocation2 + $0x4a] ss:$2 sm:$0xff]  ;;  %v475_v58 = vmul.f32 %v1330_v23, %v456_v54  ;;  %v410_v1 = vadd.f32 %v402_v52, %v365_v51  ;;  %v519_v11 = vadd.f32 %v511_v50, %v482_v59  ;;  %v1397_v12 = vmul.f32 %v1366_v37, %v604_v7  ;;  %v385_v17 = vld [vmem:[#allocation2 + $0x61] ss:$2 sm:$0xff]  ;;  %v387_v21 = vld [vmem:[#allocation2 + $0x91] ss:$2 sm:$0xff] }
  0x35   : > { %v549_v61 = vmul.f32 %v1344_v28, %v530_v56  ;;  %v565_v62 = vld [vmem:[#allocation2 + $0x30] ss:$2 sm:$0xff]  ;;  %v567_v63 = vld [vmem:[#allocation2 + $0x60] ss:$2 sm:$0xff]  ;;  %v403_v22 = vmul.f32 %v1293_v4, %v385_v17  ;;  %v404_v29 = vmul.f32 %v1293_v4, %v387_v21  ;;  %v495_v34 = vld [vmem:[#allocation2 + $0x79] ss:$2 sm:$0xff]  ;;  %v476_v39 = vmul.f32 %v1330_v23, %v458_v32 }
  0x36   : > { %v585_v3 = vmul.f32 %v1361_v36, %v565_v62  ;;  %v1393_v6 = vmul.f32 %v1361_v36, %v567_v63  ;;  %v639_v9 = vld [vmem:[#allocation2 + $0x32] ss:$2 sm:$0xff]  ;;  %v641_v10 = vld [vmem:[#allocation2 + $0x62] ss:$2 sm:$0xff]  ;;  %v447_v18 = vadd.f32 %v439_v53, %v410_v1  ;;  %v556_v27 = vadd.f32 %v548_v57, %v519_v11  ;;  %v497_v41 = vld [vmem:[#allocation2 + $0xa9] ss:$2 sm:$0xff] }
  0x37   : > { %v659_v13 = vmul.f32 %v1377_v45, %v639_v9  ;;  %v1401_v14 = vmul.f32 %v1377_v45, %v641_v10  ;;  %v348_v15 = vld [vmem:[#allocation2 + $0x60] ss:$2 sm:$0xff]  ;;  %v350_v16 = vld [vmem:[#allocation2 + $0x90] ss:$2 sm:$0xff]  ;;  %v513_v47 = vmul.f32 %v1335_v24, %v495_v34  ;;  %v514_v48 = vmul.f32 %v1335_v24, %v497_v41  ;;  %v606_v51 = vld [vmem:[#allocation2 + $0x91] ss:$2 sm:$0xff] }
  0x38   : > { %v366_v19 = vmul.f32 %v1280_v2, %v348_v15  ;;  %v367_v20 = vmul.f32 %v1280_v2, %v350_v16  ;;  %v422_v25 = vld [vmem:[#allocation2 + $0x62] ss:$2 sm:$0xff]  ;;  %v424_v26 = vld [vmem:[#allocation2 + $0x92] ss:$2 sm:$0xff]  ;;  %v483_v35 = vadd.f32 %v475_v58, %v447_v18  ;;  %v593_v44 = vadd.f32 %v585_v3, %v556_v27  ;;  %v608_v57 = vld [vmem:[#allocation2 + $0xc1] ss:$2 sm:$0xff] }
  0x39   : > { %v440_v30 = vmul.f32 %v1298_v5, %v422_v25  ;;  %v441_v31 = vmul.f32 %v1298_v5, %v424_v26  ;;  %v460_v33 = vld [vmem:[#allocation2 + $0xa8] ss:$2 sm:$0xff]  ;;  %v1416_v53 = vld [vmem:[%s1588_s2] ss:$0 sm:$0xff]  ;;  %v302_v7 = vld [vmem:[%s1288_s13 + $0xb8] sm:$0xff]  ;;  %v1426_v11 = vmul.f32 %v1366_v37, %v606_v51  ;;  %v1429_v15 = vmul.f32 %v1366_v37, %v608_v57 }
  0x3a   : > { %v411_v38 = vadd.f32 %v403_v22, %v366_v19  ;;  %v477_v40 = vmul.f32 %v1330_v23, %v460_v33  ;;  %v532_v42 = vld [vmem:[#allocation2 + $0x7a] ss:$2 sm:$0xff]  ;;  %v534_v43 = vld [vmem:[#allocation2 + $0xaa] ss:$2 sm:$0xff]  ;;  %v412_v46 = vadd.f32 %v404_v29, %v367_v20  ;;  %v520_v52 = vadd.f32 %v512_v60, %v483_v35  ;;  %335 = vst.msk [vmem:[#allocation2 + $0x129] sm:$0xff] %vm223_vm0, %v302_v7 }
  0x3b   : > { %v569_v49 = vld [vmem:[#allocation2 + $0x90] ss:$2 sm:$0xff]  ;;  %v571_v50 = vld [vmem:[#allocation2 + $0xc0] ss:$2 sm:$0xff]  ;;  %v550_v55 = vmul.f32 %v1344_v28, %v532_v42  ;;  %v551_v56 = vmul.f32 %v1344_v28, %v534_v43  ;;  %v630_v62 = vadd.f32 %v622_v8, %v593_v44  ;;  %v389_v17 = vld [vmem:[#allocation2 + $0xc1] ss:$2 sm:$0xff] }
  0x3c   : > { %v448_v54 = vadd.f32 %v440_v30, %v411_v38  ;;  %v643_v58 = vld [vmem:[#allocation2 + $0x92] ss:$2 sm:$0xff]  ;;  %v645_v59 = vld [vmem:[#allocation2 + $0xc2] ss:$2 sm:$0xff]  ;;  %v449_v63 = vadd.f32 %v441_v31, %v412_v46  ;;  %v587_v0 = vmul.f32 %v1361_v36, %v569_v49  ;;  %v588_v1 = vmul.f32 %v1361_v36, %v571_v50  ;;  %v391_v21 = vld [vmem:[#allocation2 + $0xf1] ss:$2 sm:$0xff] }
  0x3d   : > { %v300_v60 = vld [vmem:[%s1288_s13 + $0xa8] sm:$0xff]  ;;  %v301_v3 = vld [vmem:[%s1288_s13 + $0xb0] sm:$0xff]  ;;  %v557_v9 = vadd.f32 %v549_v61, %v520_v52  ;;  %v667_v18 = vadd.f32 %v659_v13, %v630_v62  ;;  %v1435_v61 = vmul.f32 %v1377_v45, %v643_v58  ;;  %v1438_v20 = vmul.f32 %v1377_v45, %v645_v59  ;;  %v462_v34 = vld [vmem:[#allocation2 + $0xd8] ss:$2 sm:$0xff] }
  0x3e   : > { %v484_v10 = vadd.f32 %v476_v39, %v448_v54  ;;  %333 = vst.msk [vmem:[#allocation2 + $0x111] sm:$0xff] %vm223_vm0, %v300_v60  ;;  %334 = vst.msk [vmem:[#allocation2 + $0x121] sm:$0xff] %vm223_vm0, %v301_v3  ;;  %v352_v8 = vld [vmem:[#allocation2 + $0xc0] ss:$2 sm:$0xff]  ;;  %v354_v16 = vld [vmem:[#allocation2 + $0xf0] ss:$2 sm:$0xff]  ;;  %v485_v19 = vadd.f32 %v477_v40, %v449_v63  ;;  %v405_v32 = vmul.f32 %v1293_v4, %v389_v17 }
  0x3f   : > { %v426_v22 = vld [vmem:[#allocation2 + $0xc2] ss:$2 sm:$0xff]  ;;  %v428_v25 = vld [vmem:[#allocation2 + $0xf2] ss:$2 sm:$0xff]  ;;  %v594_v26 = vadd.f32 %v1393_v6, %v557_v9  ;;  %v368_v29 = vmul.f32 %v1280_v2, %v352_v8  ;;  %v369_v13 = vmul.f32 %v1280_v2, %v354_v16  ;;  %v1444_v30 = vadd.f32 %v1416_v53, %v667_v18  ;;  %v499_v6 = vld [vmem:[#allocation2 + $0xd9] ss:$2 sm:$0xff] }
  0x40   : > { %v521_v27 = vadd.f32 %v513_v47, %v484_v10  ;;  %v522_v31 = vadd.f32 %v514_v48, %v485_v19  ;;  %v406_v33 = vmul.f32 %v1293_v4, %v391_v21  ;;  %v536_v35 = vld [vmem:[#allocation2 + $0xda] ss:$2 sm:$0xff]  ;;  %v442_v40 = vmul.f32 %v1298_v5, %v426_v22  ;;  %v305_v44 = vld [vmem:[%s1288_s13 + $0xd0] sm:$0xff] }
  0x41   : > { %v631_v38 = vadd.f32 %v1397_v12, %v594_v26  ;;  %v443_v41 = vmul.f32 %v1298_v5, %v428_v25  ;;  %v303_v42 = vld [vmem:[%s1288_s13 + $0xc0] sm:$0xff]  ;;  %v304_v43 = vld [vmem:[%s1288_s13 + $0xc8] sm:$0xff]  ;;  %v690_v46 = vmax.f32 %v1444_v30, 0.0  ;;  %v413_v48 = vadd.f32 %v405_v32, %v368_v29  ;;  %v306_v50 = vld [vmem:[%s1288_s13 + $0xd8] sm:$0xff]  ;;  %338 = vst.msk [vmem:[#allocation2 + $0x151] sm:$0xff] %vm223_vm0, %v305_v44 }
  0x42   : > { %v558_v39 = vadd.f32 %v550_v55, %v521_v27  ;;  %v559_v47 = vadd.f32 %v551_v56, %v522_v31  ;;  %v414_v49 = vadd.f32 %v406_v33, %v369_v13  ;;  %v307_v51 = vld [vmem:[%s1288_s13 + $0xe0] sm:$0xff]  ;;  %v308_v52 = vld [vmem:[%s1288_s13 + $0xe8] sm:$0xff]  ;;  %336 = vst.msk [vmem:[#allocation2 + $0x139] sm:$0xff] %vm223_vm0, %v303_v42  ;;  %337 = vst.msk [vmem:[#allocation2 + $0x141] sm:$0xff] %vm223_vm0, %v304_v43 }
  0x43   : > { %v668_v12 = vadd.f32 %v1401_v14, %v631_v38  ;;  %v478_v55 = vmul.f32 %v1330_v23, %v462_v34  ;;  %v515_v57 = vmul.f32 %v1335_v24, %v499_v6  ;;  %v573_v58 = vld [vmem:[#allocation2 + $0xf0] ss:$2 sm:$0xff]  ;;  %339 = vst.msk [vmem:[#allocation2 + $0x159] sm:$0xff] %vm223_vm0, %v306_v50  ;;  %340 = vst.msk [vmem:[#allocation2 + $0x169] sm:$0xff] %vm223_vm0, %v307_v51  ;;  %v610_v17 = vld [vmem:[#allocation2 + $0xf1] ss:$2 sm:$0xff] }
  0x44   : > { %v595_v54 = vadd.f32 %v587_v0, %v558_v39  ;;  %v309_v56 = vld [vmem:[%s1288_s13 + $0xf0] sm:$0xff]  ;;  %v310_v59 = vld [vmem:[%s1288_s13 + $0xf8] sm:$0xff]  ;;  %341 = vst.msk [vmem:[#allocation2 + $0x171] sm:$0xff] %vm223_vm0, %v308_v52  ;;  %v596_v62 = vadd.f32 %v588_v1, %v559_v47  ;;  %v450_v63 = vadd.f32 %v442_v40, %v413_v48  ;;  %v451_v60 = vadd.f32 %v443_v41, %v414_v49 }
  0x45   : > { %v464_v3 = vld [vmem:[#allocation2 + $0x108] ss:$2 sm:$0xff]  ;;  %v501_v7 = vld [vmem:[#allocation2 + $0x109] ss:$2 sm:$0xff]  ;;  %v552_v0 = vmul.f32 %v1344_v28, %v536_v35  ;;  %342 = vst.msk [vmem:[#allocation2 + $0x181] sm:$0xff] %vm223_vm0, %v309_v56  ;;  %343 = vst.msk [vmem:[#allocation2 + $0x189] sm:$0xff] %vm223_vm0, %v310_v59  ;;  %v683_v9 = vadd.f32 %v1416_v53, %v668_v12  ;;  %v589_v25 = vmul.f32 %v1361_v36, %v573_v58 }
  0x46   : > { %v538_v14 = vld [vmem:[#allocation2 + $0x10a] ss:$2 sm:$0xff]  ;;  %v632_v10 = vadd.f32 %v1426_v11, %v595_v54  ;;  %v479_v8 = vmul.f32 %v1330_v23, %v464_v3  ;;  %v516_v16 = vmul.f32 %v1335_v24, %v501_v7  ;;  %v612_v18 = vld [vmem:[#allocation2 + $0x121] ss:$2 sm:$0xff]  ;;  %v633_v19 = vadd.f32 %v1429_v15, %v596_v62 }
  0x47   : > { %v575_v1 = vld [vmem:[#allocation2 + $0x120] ss:$2 sm:$0xff]  ;;  %v486_v21 = vadd.f32 %v478_v55, %v450_v63  ;;  %v553_v22 = vmul.f32 %v1344_v28, %v538_v14  ;;  %v691_v27 = vmax.f32 %v683_v9, 0.0  ;;  %v626_v34 = vmul.f32 %v1366_v37, %v610_v17  ;;  %v393_v35 = vld [vmem:[#allocation2 + $0x121] ss:$2 sm:$0xff] }
  0x48   : > { %v647_v26 = vld [vmem:[#allocation2 + $0xf2] ss:$2 sm:$0xff]  ;;  %v669_v29 = vadd.f32 %v1435_v61, %v632_v10  ;;  %v487_v13 = vadd.f32 %v479_v8, %v451_v60  ;;  %v590_v11 = vmul.f32 %v1361_v36, %v575_v1  ;;  %v649_v30 = vld [vmem:[#allocation2 + $0x122] ss:$2 sm:$0xff]  ;;  %v670_v15 = vadd.f32 %v1438_v20, %v633_v19 }
  0x49   : > { %v356_v31 = vld [vmem:[#allocation2 + $0x120] ss:$2 sm:$0xff]  ;;  %v523_v33 = vadd.f32 %v515_v57, %v486_v21  ;;  %v627_v6 = vmul.f32 %v1366_v37, %v612_v18  ;;  %v1007_v61 = vpack.c.bf16 %v691_v27, %v690_v46  ;;  %v663_v40 = vmul.f32 %v1377_v45, %v647_v26  ;;  %v503_v59 = vld [vmem:[#allocation2 + $0x139] ss:$2 sm:$0xff] }
  0x4a   : > { %v684_v38 = vadd.f32 %v1416_v53, %v669_v29  ;;  %v524_v39 = vadd.f32 %v516_v16, %v487_v13  ;;  %v430_v41 = vld [vmem:[#allocation2 + $0x122] ss:$2 sm:$0xff]  ;;  %v685_v43 = vadd.f32 %v1416_v53, %v670_v15  ;;  %v664_v47 = vmul.f32 %v1377_v45, %v649_v30  ;;  %v395_v49 = vld [vmem:[#allocation2 + $0x151] ss:$2 sm:$0xff]  ;;  %v432_v50 = vld [vmem:[#allocation2 + $0x152] ss:$2 sm:$0xff] }
  0x4b   : > { %v466_v42 = vld [vmem:[#allocation2 + $0x138] ss:$2 sm:$0xff]  ;;  %v560_v44 = vadd.f32 %v552_v0, %v523_v33  ;;  %v370_v48 = vmul.f32 %v1280_v2, %v356_v31  ;;  %1009 = vmatprep.subr.msk.bf16.mxu0 %vm1483_vm2, %v1007_v61  ;;  %v407_v12 = vmul.f32 %v1293_v4, %v393_v35  ;;  %v468_v54 = vld [vmem:[#allocation2 + $0x168] ss:$2 sm:$0xff]  ;;  %v408_v58 = vmul.f32 %v1293_v4, %v395_v49  ;;  %v614_v13 = vld [vmem:[#allocation2 + $0x151] ss:$2 sm:$0xff] }
  0x4c   : > { %v358_v20 = vld [vmem:[#allocation2 + $0x150] ss:$2 sm:$0xff]  ;;  %v692_v46 = vmax.f32 %v684_v38, 0.0  ;;  %v561_v51 = vadd.f32 %v553_v22, %v524_v39  ;;  %1012 = vmatpush3.bf16.xpose.msk.msra.mxu0 %vm1483_vm2, %v1007_v61  ;;  %v693_v55 = vmax.f32 %v685_v43, 0.0  ;;  %v444_v56 = vmul.f32 %v1298_v5, %v430_v41  ;;  %v579_v26 = vld [vmem:[#allocation2 + $0x180] ss:$2 sm:$0xff] }
  0x4d   : > { %v371_v52 = vmul.f32 %v1280_v2, %v358_v20  ;;  %v597_v57 = vadd.f32 %v589_v25, %v560_v44  ;;  %v415_v63 = vadd.f32 %v407_v12, %v370_v48  ;;  %v445_v60 = vmul.f32 %v1298_v5, %v432_v50  ;;  %v505_v2 = vld [vmem:[#allocation2 + $0x169] ss:$2 sm:$0xff]  ;;  %v540_v10 = vld [vmem:[#allocation2 + $0x13a] ss:$2 sm:$0xff]  ;;  %v542_v1 = vld [vmem:[#allocation2 + $0x16a] ss:$2 sm:$0xff] }
  0x4e   : > { %v598_v62 = vadd.f32 %v590_v11, %v561_v51  ;;  %v480_v3 = vmul.f32 %v1330_v23, %v466_v42  ;;  %v1013_v7 = vpack.c.bf16 %v693_v55, %v692_v46  ;;  %v481_v9 = vmul.f32 %v1330_v23, %v468_v54  ;;  %v577_v19 = vld [vmem:[#allocation2 + $0x150] ss:$2 sm:$0xff]  ;;  %v616_v15 = vld [vmem:[#allocation2 + $0x181] ss:$2 sm:$0xff] }
  0x4f   : > { %v634_v14 = vadd.f32 %v626_v34, %v597_v57  ;;  %v416_v0 = vadd.f32 %v408_v58, %v371_v52  ;;  %v452_v16 = vadd.f32 %v444_v56, %v415_v63  ;;  %v517_v4 = vmul.f32 %v1335_v24, %v503_v59 }
  0x50   : > { %v635_v8 = vadd.f32 %v627_v6, %v598_v62  ;;  %1015 = vmatprep.subr.msk.bf16.mxu0 %vm1483_vm2, %v1013_v7  ;;  %v518_v5 = vmul.f32 %v1335_v24, %v505_v2  ;;  %v554_v25 = vmul.f32 %v1344_v28, %v540_v10  ;;  %v555_v29 = vmul.f32 %v1344_v28, %v542_v1  ;;  %v651_v6 = vld [vmem:[#allocation2 + $0x152] ss:$2 sm:$0xff]  ;;  %v653_v28 = vld [vmem:[#allocation2 + $0x182] ss:$2 sm:$0xff] }
  0x51   : > { %v671_v17 = vadd.f32 %v663_v40, %v634_v14  ;;  %v453_v18 = vadd.f32 %v445_v60, %v416_v0  ;;  %v488_v22 = vadd.f32 %v480_v3, %v452_v16  ;;  %v591_v31 = vmul.f32 %v1361_v36, %v577_v19 }
  0x52   : > { %v672_v21 = vadd.f32 %v664_v47, %v635_v8  ;;  %v592_v34 = vmul.f32 %v1361_v36, %v579_v26  ;;  %v628_v38 = vmul.f32 %v1366_v37, %v614_v13  ;;  %v629_v40 = vmul.f32 %v1366_v37, %v616_v15 }
  0x53   : > { %v686_v23 = vadd.f32 %v1416_v53, %v671_v17  ;;  %v489_v27 = vadd.f32 %v481_v9, %v453_v18  ;;  %v525_v30 = vadd.f32 %v517_v4, %v488_v22  ;;  %v665_v43 = vmul.f32 %v1377_v45, %v651_v6 }
  0x54   : > { %v687_v11 = vadd.f32 %v1416_v53, %v672_v21  ;;  %1018 = vmatpush3.bf16.xpose.msk.msra.mxu0 %vm1483_vm2, %v1013_v7  ;;  %v666_v47 = vmul.f32 %v1377_v45, %v653_v28  ;;  %v699_v45 = vld [vmem:[%s1589_s3 + $0x8] sm:$0xff] }
  0x55   : > { %v694_v24 = vmax.f32 %v686_v23, 0.0  ;;  %v526_v33 = vadd.f32 %v518_v5, %v489_v27  ;;  %v562_v61 = vadd.f32 %v554_v25, %v525_v30 }
  0x56   : > { %v695_v35 = vmax.f32 %v687_v11, 0.0 }
  0x57   : > { %v563_v39 = vadd.f32 %v555_v29, %v526_v33  ;;  %v599_v42 = vadd.f32 %v591_v31, %v562_v61 }
  0x58   : > { %v1019_v41 = vpack.c.bf16 %v695_v35, %v694_v24 }
  0x59   : > { %v600_v44 = vadd.f32 %v592_v34, %v563_v39  ;;  %v636_v36 = vadd.f32 %v628_v38, %v599_v42 }
  0x5a   : > { %1021 = vmatprep.subr.msk.bf16.mxu0 %vm1483_vm2, %v1019_v41 }
  0x5b   : > { %v637_v20 = vadd.f32 %v629_v40, %v600_v44  ;;  %v673_v48 = vadd.f32 %v665_v43, %v636_v36 }
  0x5c   : > { %1024 = vmatpush3.bf16.xpose.msk.msra.mxu0 %vm1483_vm2, %v1019_v41 }
  0x5d   : > { %v674_v49 = vadd.f32 %v666_v47, %v637_v20  ;;  %v688_v37 = vadd.f32 %v1416_v53, %v673_v48 }
  0x5f   : > { %v689_v50 = vadd.f32 %v1416_v53, %v674_v49  ;;  %v696_v46 = vmax.f32 %v688_v37, 0.0 }
  0x61   : > { %v697_v51 = vmax.f32 %v689_v50, 0.0 }
  0x63   : > { %v1025_v52 = vpack.c.bf16 %v697_v51, %v696_v46 }
  0x65   : > { %1027 = vmatprep.subr.msk.bf16.mxu0 %vm1483_vm2, %v1025_v52 }
  0x66   : > { %1030 = vmatpush3.bf16.xpose.msk.msra.mxu0 %vm1483_vm2, %v1025_v52 }
  0x6d   : > { %1005 = vmatmul.mubr.msk.f32.vlgmr.msra.gmra.mrb[0].mxu0 %vm223_vm0, %v699_v45 }
  0x91   : > { %v705_v12 = vpop.permute.xlu0 %704 }
  0x95   : > { %v710_v54 = vpop.permute.xlu0 %709 }
 0x140   : > { %v1006_v53 = vpop.f32.mrb[0].mxu0 }
 0x141   : > { %v814_v55 = vadd.f32 %v1006_v53, %v710_v54  ;;  %v808_v57 = vpop.f32.mrb[1].mxu0 }
 0x142   : > { %v809_v32 = vadd.f32 %v808_v57, %v705_v12 }
 0x143   : > { %v818_v58 = vmax.f32 %v814_v55, 0.0 }
 0x144   : > { %v817_v56 = vmax.f32 %v809_v32, 0.0 }
 0x145   : > { %821 = vst.msk [vmem:[%s217_s8 + $0x8] sm:$0xff] %vm819_vm3, %v818_v58 }
 0x146   : > { %820 = vst.msk [vmem:[%s217_s8] sm:$0xff] %vm819_vm3, %v817_v56 }
 0x147   : > { %1088 = shalt.err (!%p1085_p3)
}
 0x148   : > { %s1089_s25 = scalar_lea.hbm %s1543_s14, 256  ;;  %s1093_s30 = scalar_lea.hbm %s1591_s5, 512 }
 0x149   : > { %p1090_p4 = scmp.ne.s32.totalorder %s1543_s14, %s1089_s25  ;;  %p1094_p9 = scmp.lt.u32.totalorder %s1543_s14, %s1591_s5 }
 0x14a   : > { %p1095_p10 = scmp.lt.u32.totalorder %s1093_s30, %s1089_s25  ;;  %p1097_p12 = scmp.lt.u32.totalorder %s1089_s25, %s1543_s14 }
 0x14b   : > { %p1091_p7 = pnand %p1090_p4, %p1212_p5 }
 0x14c   : > { %p1096_p11 = por %p1095_p10, %p1094_p9 }
 0x14d   : > { %p1092_p8 = pneg %p1091_p7 }
 0x14e   : > { %p1098_p13 = por %p1097_p12, %p1096_p11 }
 0x150   : > { %p1099_p0 = pnand %p1098_p13, %p1092_p8 }
 0x152   : > { %1102 = shalt.err (!%p1099_p0)
}
 0x153   : > { %s1142_s8 = smov 128   ;;  %s1143_s10 = smov 8  }
 0x154   : > { %1031 = dma.vmem_to_hbm [thread:$0]  (%p1212_p5), %s1538_s9, 256, %s1543_s14, %s1545_s15, %s1142_s8, %s1142_s8, %s1143_s10  }
 0x155 PF: > { %p1037_p1 = scmp.ge.s32.totalorder %s1137_s21, 2  ;;  %s851_s11 = sand.u32 1, %s1125_s18  }
 0x156   : > { %s852_s12 = scalar_lea.sflag [#allocation4], %s851_s11 }
 0x157   : > { %p1034_p2 = pnand %p1037_p1, %p1216_p6 }
 0x159   : > { %1120 = dma.done.wait (!%p1034_p2), %s852_s12, 256  }
 0x15a   : > { %1122 = vsyncadd (!%p1034_p2), %s852_s12, 4294967040  ;;  %p15_p3 = scmp.ge.s32.totalorder %s1199_s24, 4   ;;  %s1596_s18 = smov %s1129_s19 }
 0x15b   : > { %s1597_s19 = smov %s1133_s20  ;;  %s1598_s20 = smov %s1210_s27 }
 0x15c   : > { %s1599_s21 = smov %s1199_s24  ;;  %17 = sbr.rel (!%p15_p3) target bundleno = 3 (0x3), region = 146 }
 0x163   :  { %857 = vsyncpa [#allocation4], 1 }
 0x164   :  { %859 = vsyncpa [#allocation4 + $0x1], 1 }

</bundles_post_ra>
